<compile_context>
chip_gen: v6e
topology: v6e:2x2x1
jax: 0.10.0
libtpu: 0.0.40
codegen_flags: <defaults>
</compile_context>

<pallas_src>
import jax
import jax.numpy as jnp
from jax.experimental import pallas as pl
from jax.experimental.pallas import tpu as pltpu

_LANE = 128
_MAX_TB = 2048                           # max rows per grid step
# Conservative across generations (v7x: 64 MiB physical, 32 MiB scoped default).
_INPUT_VMEM_BUDGET = 12 * 1024 * 1024    # double-buffered U+I tiles
_VMEM_LIMIT = 32 * 1024 * 1024


def _mf_kernel(u_ref, i_ref, bias_ref, out_ref):
    # u_ref, i_ref:       (TB, E) f32 gathered embedding rows (natural layout)
    # bias_ref, out_ref:  (TB, 1) f32; bias = b_u + b_i + mean precomputed outside
    # Row-wise dot = VPU multiply + XLU cross-lane reduce; HBM-bound, so the
    # lane reduce and the masked 1-lane output stores are hidden under DMA.
    prod = u_ref[...] * i_ref[...]
    out_ref[...] = jnp.sum(prod, axis=-1, keepdims=True) + bias_ref[...]


def _round_up(x, m):
    return ((x + m - 1) // m) * m


def _pick_tile(batch, emb):
    """Lane-aligned batch tiling.

    Splits the batch nearly evenly across grid steps (padding never exceeds
    ~grid*128 rows), forces >= 2 steps when possible so both v7x TensorCores
    get work, and keeps double-buffered U+I tiles within the VMEM budget.
    """
    b_lane = _round_up(batch, _LANE)

    # Largest tile whose double-buffered U+I copies fit the input budget.
    max_tb = _MAX_TB
    while max_tb > _LANE and 2 * 2 * emb * max_tb * 4 > _INPUT_VMEM_BUDGET:
        max_tb -= _LANE
    assert 2 * 2 * emb * _LANE * 4 <= _INPUT_VMEM_BUDGET, (
        f"embedding_size={emb} too large for the VMEM budget even at tb=128")

    grid = pl.cdiv(b_lane, max_tb)
    if b_lane >= 2 * _LANE:
        grid = max(grid, 2)              # megacore: give both TensorCores a step
    tb = _round_up(pl.cdiv(b_lane, grid), _LANE)
    b_pad = grid * tb
    return tb, b_pad, grid


@jax.jit
def mf_forward(params, u_id, i_id):
    user_emb = params["user_emb"]
    item_emb = params["item_emb"]
    user_bias = params["user_bias"]
    item_bias = params["item_bias"]
    mean = params["mean"][0].astype(jnp.float32)

    B = u_id.shape[0]
    E = user_emb.shape[1]
    tb, b_pad, grid = _pick_tile(B, E)

    # Pad ids up to the tile multiple (index 0 is always valid); padded rows
    # produce garbage that is sliced off below.
    pad = b_pad - B
    u_ids = jnp.pad(u_id, (0, pad))
    i_ids = jnp.pad(i_id, (0, pad))

    # Embedding gathers stay as XLA glue but in natural (b_pad, E) layout, so
    # nothing is re-written / transposed between the gather and the kernel.
    # TODO(synk): fuse the row gather into the kernel (scalar-prefetched ids +
    # per-row make_async_copy from ANY-space tables with 8-16 DMAs in flight)
    # so each embedding table is read from HBM exactly once.
    U = jnp.take(user_emb, u_ids, axis=0)                         # (b_pad, E)
    I = jnp.take(item_emb, i_ids, axis=0)                         # (b_pad, E)
    # Fold both biases and the global mean into one lane-1 stream.
    bias = (jnp.take(user_bias[:, 0], u_ids, axis=0)
            + jnp.take(item_bias[:, 0], i_ids, axis=0)
            + mean).reshape(b_pad, 1)                             # (b_pad, 1)
    # TODO(synk): optionally stage U/I in bf16 and upcast in-kernel to halve
    # the dominant HBM streams (changes precision vs the f32 torch reference).

    out = pl.pallas_call(
        _mf_kernel,
        out_shape=jax.ShapeDtypeStruct((b_pad, 1), jnp.float32),
        grid_spec=pltpu.PrefetchScalarGridSpec(
            num_scalar_prefetch=0,
            grid=(grid,),
            in_specs=[
                pl.BlockSpec((tb, E), lambda b: (b, 0)),          # U tile
                pl.BlockSpec((tb, E), lambda b: (b, 0)),          # I tile
                pl.BlockSpec((tb, 1), lambda b: (b, 0)),          # fused bias
            ],
            out_specs=pl.BlockSpec((tb, 1), lambda b: (b, 0)),
        ),
        compiler_params=pltpu.CompilerParams(
            dimension_semantics=("parallel",),
            vmem_limit_bytes=_VMEM_LIMIT,
        ),
    )(U, I, bias)

    # Matches torch: diag(U @ I.T) + b_u.squeeze() + b_i.squeeze() + mean -> (B,)
    return out[:B, 0]


def init_params(key, num_users, num_items, mean, embedding_size):
    k1, k2, k3, k4 = jax.random.split(key, 4)
    return {
        "user_emb": jax.random.uniform(
            k1, (num_users, embedding_size), jnp.float32, 0.0, 0.005),
        "user_bias": jax.random.uniform(
            k2, (num_users, 1), jnp.float32, -0.01, 0.01),
        "item_emb": jax.random.uniform(
            k3, (num_items, embedding_size), jnp.float32, 0.0, 0.005),
        "item_bias": jax.random.uniform(
            k4, (num_items, 1), jnp.float32, -0.01, 0.01),
        "mean": jnp.asarray([mean], jnp.float32),
    }


def _run_case(num_users, num_items, embedding_size, batch, rating_mean, key):
    kp, ku, ki = jax.random.split(key, 3)
    params = init_params(kp, num_users, num_items, rating_mean, embedding_size)
    u_id = jax.random.randint(ku, (batch,), 0, num_users, dtype=jnp.int32)
    i_id = jax.random.randint(ki, (batch,), 0, num_items, dtype=jnp.int32)

    out = jax.block_until_ready(mf_forward(params, u_id, i_id))

    # Pure-JAX reference.
    U = jnp.take(params["user_emb"], u_id, axis=0)
    I = jnp.take(params["item_emb"], i_id, axis=0)
    ref = (jnp.sum(U * I, axis=-1)
           + jnp.take(params["user_bias"], u_id, axis=0)[:, 0]
           + jnp.take(params["item_bias"], i_id, axis=0)[:, 0]
           + params["mean"][0])
    assert out.shape == (batch,)
    assert jnp.allclose(out, ref, atol=1e-5, rtol=1e-5), float(
        jnp.max(jnp.abs(out - ref)))


if __name__ == "__main__":
    key = jax.random.PRNGKey(0)
    k1, k2, k3 = jax.random.split(key, 3)

    # Small case (one 128-row lane-aligned tile).
    _run_case(num_users=50, num_items=40, embedding_size=32,
              batch=16, rating_mean=3.5, key=k1)
    # PyTorch-default embedding size with an odd batch (exercises padding, E=100).
    _run_case(num_users=64, num_items=48, embedding_size=100,
              batch=37, rating_mean=3.5, key=k2)
    # Batch large enough to force >=2 grid steps (megacore path) + ragged tail.
    _run_case(num_users=200, num_items=150, embedding_size=100,
              batch=300, rating_mean=3.5, key=k3)

    print("KERNEL_OK")
</pallas_src>

<mosaic_0001>
module attributes {stable_mosaic.version = 11 : i64} {
  func.func @_mf_kernel(%arg0: i32, %arg1: memref<128x32xf32, #tpu.memory_space<vmem>>, %arg2: memref<128x32xf32, #tpu.memory_space<vmem>>, %arg3: memref<128x1xf32, #tpu.memory_space<vmem>>, %arg4: memref<128x1xf32, #tpu.memory_space<vmem>>) attributes {dimension_semantics = [#tpu.dimension_semantics<parallel>], iteration_bounds = array<i64: 1>, scalar_prefetch = 0 : i64, scratch_operands = 0 : i64, tpu.core_type = #tpu.core_type<tc>, window_params = [{transform_indices = @transform_0, window_bounds = array<i64: 128, 32>}, {transform_indices = @transform_1, window_bounds = array<i64: 128, 32>}, {transform_indices = @transform_2, window_bounds = array<i64: 128, 1>}, {transform_indices = @transform_3, window_bounds = array<i64: 128, 1>}]} {
    %c0 = arith.constant 0 : index
    %c0_0 = arith.constant 0 : index
    %0 = vector.load %arg1[%c0, %c0_0] : memref<128x32xf32, #tpu.memory_space<vmem>>, vector<128x32xf32>
    %c0_1 = arith.constant 0 : index
    %c0_2 = arith.constant 0 : index
    %1 = vector.load %arg2[%c0_1, %c0_2] : memref<128x32xf32, #tpu.memory_space<vmem>>, vector<128x32xf32>
    %2 = arith.mulf %0, %1 : vector<128x32xf32>
    %cst = arith.constant dense<0.000000e+00> : vector<128xf32>
    %3 = vector.multi_reduction <add>, %2, %cst [1] : vector<128x32xf32> to vector<128xf32>
    %4 = vector.shape_cast %3 : vector<128xf32> to vector<128x1xf32>
    %c0_3 = arith.constant 0 : index
    %c0_4 = arith.constant 0 : index
    %5 = vector.load %arg3[%c0_3, %c0_4] : memref<128x1xf32, #tpu.memory_space<vmem>>, vector<128x1xf32>
    %6 = arith.addf %4, %5 : vector<128x1xf32>
    %c0_5 = arith.constant 0 : index
    %c0_6 = arith.constant 0 : index
    %7 = vector.load %arg4[%c0_5, %c0_6] : memref<128x1xf32, #tpu.memory_space<vmem>>, vector<128x1xf32>
    tpu.vector_store %arg4[%c0_5, %c0_6], %6 {strides = array<i32>} : memref<128x1xf32, #tpu.memory_space<vmem>>, vector<128x1xf32>,
    return
  }
  func.func @transform_0(%arg0: i32) -> (i32, i32) {
    %c0_i32 = arith.constant 0 : i32
    %c0_i32_0 = arith.constant 0 : i32
    return %arg0, %c0_i32 : i32, i32
  }
  func.func @transform_1(%arg0: i32) -> (i32, i32) {
    %c0_i32 = arith.constant 0 : i32
    %c0_i32_0 = arith.constant 0 : i32
    return %arg0, %c0_i32 : i32, i32
  }
  func.func @transform_2(%arg0: i32) -> (i32, i32) {
    %c0_i32 = arith.constant 0 : i32
    %c0_i32_0 = arith.constant 0 : i32
    return %arg0, %c0_i32 : i32, i32
  }
  func.func @transform_3(%arg0: i32) -> (i32, i32) {
    %c0_i32 = arith.constant 0 : i32
    %c0_i32_0 = arith.constant 0 : i32
    return %arg0, %c0_i32 : i32, i32
  }
}

</mosaic_0001>

<bundles_post_ra>
// kernel: mf_forward.1
= control target key start
LH: loop header
LB: loop body
LE: loop exit
PB: predicated region body
PF: predicated region fallthrough
CT: control target
= control target key end

     0   :  { %vm62_vm0 = vcmask 261120   ;;  %vm143_vm1 = vcmask 7168   ;;  %s408_s0 = inlined_call_operand.vmem [shape: f32[128,32], index: 0, kind: input, shape index: {}]   ;;  %s409_s1 = inlined_call_operand.vmem [shape: f32[128,32], index: 1, kind: input, shape index: {}]   ;;  %s410_s2 = inlined_call_operand.vmem [shape: f32[128,1], index: 2, kind: input, shape index: {}]   ;;  %s411_s3 = inlined_call_operand.vmem [shape: f32[128,1], index: 3, kind: output, shape index: {}]  }
   0x1   :  { %v16_v0 = vld [vmem:[%s408_s0 + $0x10] sm:$0xff]  ;;  %v14_v2 = vld [vmem:[%s408_s0] sm:$0xff]  ;;  %v17_v5 = vld [vmem:[%s408_s0 + $0x18] sm:$0xff] }
   0x2   :  { %v32_v1 = vld [vmem:[%s409_s1 + $0x10] sm:$0xff]  ;;  %v30_v4 = vld [vmem:[%s409_s1] sm:$0xff]  ;;  %v33_v6 = vld [vmem:[%s409_s1 + $0x18] sm:$0xff] }
   0x3   :  { %v48_v3 = vmul.f32 %v32_v1, %v16_v0  ;;  %v46_v7 = vmul.f32 %v30_v4, %v14_v2  ;;  %v49_v8 = vmul.f32 %v33_v6, %v17_v5  ;;  %v15_v9 = vld [vmem:[%s408_s0 + $0x8] sm:$0xff]  ;;  %v18_v15 = vld [vmem:[%s408_s0 + $0x20] sm:$0xff]  ;;  %v21_v22 = vld [vmem:[%s408_s0 + $0x38] sm:$0xff] }
   0x4   :  { %v31_v10 = vld [vmem:[%s409_s1 + $0x8] sm:$0xff]  ;;  %v34_v16 = vld [vmem:[%s409_s1 + $0x20] sm:$0xff]  ;;  %v37_v23 = vld [vmem:[%s409_s1 + $0x38] sm:$0xff] }
   0x5   :  { %v19_v11 = vld [vmem:[%s408_s0 + $0x28] sm:$0xff]  ;;  %v69_v12 = vsel %vm62_vm0, %v48_v3, 0.0  ;;  %v47_v13 = vmul.f32 %v31_v10, %v15_v9  ;;  %v63_v17 = vsel %vm62_vm0, %v46_v7, 0.0  ;;  %v72_v18 = vsel %vm62_vm0, %v49_v8, 0.0  ;;  %v20_v24 = vld [vmem:[%s408_s0 + $0x30] sm:$0xff]  ;;  %v22_v32 = vld [vmem:[%s408_s0 + $0x40] sm:$0xff] }
   0x6   :  { %v35_v14 = vld [vmem:[%s409_s1 + $0x28] sm:$0xff]  ;;  %70 = vadd.xlane.f32.xlu1 %v69_v12  ;;  %64 = vadd.xlane.f32.xlu0 %v63_v17  ;;  %v50_v21 = vmul.f32 %v34_v16, %v18_v15  ;;  %v36_v25 = vld [vmem:[%s409_s1 + $0x30] sm:$0xff]  ;;  %v53_v27 = vmul.f32 %v37_v23, %v21_v22  ;;  %v38_v33 = vld [vmem:[%s409_s1 + $0x40] sm:$0xff] }
   0x7   :  { %v51_v19 = vmul.f32 %v35_v14, %v19_v11  ;;  %v66_v20 = vsel %vm62_vm0, %v47_v13, 0.0  ;;  %v52_v29 = vmul.f32 %v36_v25, %v20_v24  ;;  %v23_v30 = vld [vmem:[%s408_s0 + $0x48] sm:$0xff]  ;;  %v54_v37 = vmul.f32 %v38_v33, %v22_v32  ;;  %v25_v38 = vld [vmem:[%s408_s0 + $0x58] sm:$0xff]  ;;  %v24_v40 = vld [vmem:[%s408_s0 + $0x50] sm:$0xff] }
   0x8   :  { %v75_v28 = vsel %vm62_vm0, %v50_v21, 0.0  ;;  %v39_v31 = vld [vmem:[%s409_s1 + $0x48] sm:$0xff]  ;;  %v84_v34 = vsel %vm62_vm0, %v53_v27, 0.0  ;;  %v41_v39 = vld [vmem:[%s409_s1 + $0x58] sm:$0xff]  ;;  %v40_v41 = vld [vmem:[%s409_s1 + $0x50] sm:$0xff] }
   0x9   :  { %v78_v26 = vsel %vm62_vm0, %v51_v19, 0.0  ;;  %v55_v35 = vmul.f32 %v39_v31, %v23_v30  ;;  %v81_v36 = vsel %vm62_vm0, %v52_v29, 0.0  ;;  %v57_v43 = vmul.f32 %v41_v39, %v25_v38  ;;  %v27_v46 = vld [vmem:[%s408_s0 + $0x68] sm:$0xff]  ;;  %v26_v48 = vld [vmem:[%s408_s0 + $0x60] sm:$0xff]  ;;  %v29_v54 = vld [vmem:[%s408_s0 + $0x78] sm:$0xff] }
   0xa   :  { %73 = vadd.xlane.f32.xlu1 %v72_v18  ;;  %67 = vadd.xlane.f32.xlu0 %v66_v20  ;;  %v87_v44 = vsel %vm62_vm0, %v54_v37, 0.0  ;;  %v56_v45 = vmul.f32 %v40_v41, %v24_v40  ;;  %v43_v47 = vld [vmem:[%s409_s1 + $0x68] sm:$0xff]  ;;  %v42_v49 = vld [vmem:[%s409_s1 + $0x60] sm:$0xff]  ;;  %v45_v55 = vld [vmem:[%s409_s1 + $0x78] sm:$0xff] }
   0xb   :  { %v90_v42 = vsel %vm62_vm0, %v55_v35, 0.0  ;;  %v96_v50 = vsel %vm62_vm0, %v57_v43, 0.0  ;;  %v59_v51 = vmul.f32 %v43_v47, %v27_v46  ;;  %v58_v53 = vmul.f32 %v42_v49, %v26_v48  ;;  %v28_v56 = vld [vmem:[%s408_s0 + $0x70] sm:$0xff]  ;;  %v111_v1 = vld [vmem:[%s410_s2] sm:$0xff]  ;;  %v114_v6 = vld [vmem:[%s410_s2 + $0x18] sm:$0xff] }
   0xc   :  { %v93_v52 = vsel %vm62_vm0, %v56_v45, 0.0  ;;  %v44_v57 = vld [vmem:[%s409_s1 + $0x70] sm:$0xff]  ;;  %v61_v59 = vmul.f32 %v45_v55, %v29_v54  ;;  %v112_v7 = vld [vmem:[%s410_s2 + $0x8] sm:$0xff]  ;;  %v115_v13 = vld [vmem:[%s410_s2 + $0x20] sm:$0xff] }
   0xd   :  { %v102_v58 = vsel %vm62_vm0, %v59_v51, 0.0  ;;  %v99_v60 = vsel %vm62_vm0, %v58_v53, 0.0  ;;  %v60_v61 = vmul.f32 %v44_v57, %v28_v56  ;;  %v113_v0 = vld [vmem:[%s410_s2 + $0x10] sm:$0xff]  ;;  %v116_v12 = vld [vmem:[%s410_s2 + $0x28] sm:$0xff]  ;;  %v118_v18 = vld [vmem:[%s410_s2 + $0x38] sm:$0xff] }
   0xe   :  { %79 = vadd.xlane.f32.xlu1 %v78_v26  ;;  %76 = vadd.xlane.f32.xlu0 %v75_v28  ;;  %v108_v62 = vsel %vm62_vm0, %v61_v59, 0.0  ;;  %v117_v19 = vld [vmem:[%s410_s2 + $0x30] sm:$0xff]  ;;  %v120_v24 = vld [vmem:[%s410_s2 + $0x48] sm:$0xff]  ;;  %v119_v25 = vld [vmem:[%s410_s2 + $0x40] sm:$0xff] }
   0xf   :  { %v105_v63 = vsel %vm62_vm0, %v60_v61, 0.0  ;;  %v122_v30 = vld [vmem:[%s410_s2 + $0x58] sm:$0xff]  ;;  %v121_v31 = vld [vmem:[%s410_s2 + $0x50] sm:$0xff]  ;;  %v123_v37 = vld [vmem:[%s410_s2 + $0x60] sm:$0xff] }
  0x10   :  { %v125_v43 = vld [vmem:[%s410_s2 + $0x70] sm:$0xff] }
  0x12   :  { %85 = vadd.xlane.f32.xlu1 %v84_v34  ;;  %82 = vadd.xlane.f32.xlu0 %v81_v36  ;;  %v124_v36 = vld [vmem:[%s410_s2 + $0x68] sm:$0xff] }
  0x16   :  { %91 = vadd.xlane.f32.xlu1 %v90_v42  ;;  %88 = vadd.xlane.f32.xlu0 %v87_v44  ;;  %v126_v42 = vld [vmem:[%s410_s2 + $0x78] sm:$0xff] }
  0x1a   :  { %97 = vadd.xlane.f32.xlu1 %v96_v50  ;;  %94 = vadd.xlane.f32.xlu0 %v93_v52 }
  0x1e   :  { %103 = vadd.xlane.f32.xlu1 %v102_v58  ;;  %100 = vadd.xlane.f32.xlu0 %v99_v60 }
  0x22   :  { %109 = vadd.xlane.f32.xlu1 %v108_v62  ;;  %106 = vadd.xlane.f32.xlu0 %v105_v63 }
  0x8f   :  { %v71_v2 = vpop.xlane.xlu1 %70  ;;  %v65_v4 = vpop.xlane.xlu0 %64 }
  0x90   :  { %v129_v3 = vadd.f32 %v113_v0, %v71_v2  ;;  %v127_v5 = vadd.f32 %v111_v1, %v65_v4 }
  0x92   :  { %146 = vst.msk [vmem:[%s411_s3 + $0x10] sm:$0xff] %vm143_vm1, %v129_v3  ;;  %144 = vst.msk [vmem:[%s411_s3] sm:$0xff] %vm143_vm1, %v127_v5 }
  0x93   :  { %v74_v8 = vpop.xlane.xlu1 %73  ;;  %v68_v10 = vpop.xlane.xlu0 %67 }
  0x94   :  { %v130_v9 = vadd.f32 %v114_v6, %v74_v8  ;;  %v128_v11 = vadd.f32 %v112_v7, %v68_v10 }
  0x96   :  { %147 = vst.msk [vmem:[%s411_s3 + $0x18] sm:$0xff] %vm143_vm1, %v130_v9  ;;  %145 = vst.msk [vmem:[%s411_s3 + $0x8] sm:$0xff] %vm143_vm1, %v128_v11 }
  0x97   :  { %v80_v14 = vpop.xlane.xlu1 %79  ;;  %v77_v16 = vpop.xlane.xlu0 %76 }
  0x98   :  { %v132_v15 = vadd.f32 %v116_v12, %v80_v14  ;;  %v131_v17 = vadd.f32 %v115_v13, %v77_v16 }
  0x9a   :  { %149 = vst.msk [vmem:[%s411_s3 + $0x28] sm:$0xff] %vm143_vm1, %v132_v15  ;;  %148 = vst.msk [vmem:[%s411_s3 + $0x20] sm:$0xff] %vm143_vm1, %v131_v17 }
  0x9b   :  { %v86_v20 = vpop.xlane.xlu1 %85  ;;  %v83_v22 = vpop.xlane.xlu0 %82 }
  0x9c   :  { %v134_v21 = vadd.f32 %v118_v18, %v86_v20  ;;  %v133_v23 = vadd.f32 %v117_v19, %v83_v22 }
  0x9e   :  { %151 = vst.msk [vmem:[%s411_s3 + $0x38] sm:$0xff] %vm143_vm1, %v134_v21  ;;  %150 = vst.msk [vmem:[%s411_s3 + $0x30] sm:$0xff] %vm143_vm1, %v133_v23 }
  0x9f   :  { %v92_v26 = vpop.xlane.xlu1 %91  ;;  %v89_v28 = vpop.xlane.xlu0 %88 }
  0xa0   :  { %v136_v27 = vadd.f32 %v120_v24, %v92_v26  ;;  %v135_v29 = vadd.f32 %v119_v25, %v89_v28 }
  0xa2   :  { %153 = vst.msk [vmem:[%s411_s3 + $0x48] sm:$0xff] %vm143_vm1, %v136_v27  ;;  %152 = vst.msk [vmem:[%s411_s3 + $0x40] sm:$0xff] %vm143_vm1, %v135_v29 }
  0xa3   :  { %v98_v32 = vpop.xlane.xlu1 %97  ;;  %v95_v34 = vpop.xlane.xlu0 %94 }
  0xa4   :  { %v138_v33 = vadd.f32 %v122_v30, %v98_v32  ;;  %v137_v35 = vadd.f32 %v121_v31, %v95_v34 }
  0xa6   :  { %155 = vst.msk [vmem:[%s411_s3 + $0x58] sm:$0xff] %vm143_vm1, %v138_v33  ;;  %154 = vst.msk [vmem:[%s411_s3 + $0x50] sm:$0xff] %vm143_vm1, %v137_v35 }
  0xa7   :  { %v104_v38 = vpop.xlane.xlu1 %103  ;;  %v101_v40 = vpop.xlane.xlu0 %100 }
  0xa8   :  { %v140_v39 = vadd.f32 %v124_v36, %v104_v38  ;;  %v139_v41 = vadd.f32 %v123_v37, %v101_v40 }
  0xaa   :  { %157 = vst.msk [vmem:[%s411_s3 + $0x68] sm:$0xff] %vm143_vm1, %v140_v39  ;;  %156 = vst.msk [vmem:[%s411_s3 + $0x60] sm:$0xff] %vm143_vm1, %v139_v41 }
  0xab   :  { %v110_v44 = vpop.xlane.xlu1 %109  ;;  %v107_v46 = vpop.xlane.xlu0 %106 }
  0xac   :  { %v142_v45 = vadd.f32 %v126_v42, %v110_v44  ;;  %v141_v47 = vadd.f32 %v125_v43, %v107_v46 }
  0xae   :  { %159 = vst.msk [vmem:[%s411_s3 + $0x78] sm:$0xff] %vm143_vm1, %v142_v45  ;;  %158 = vst.msk [vmem:[%s411_s3 + $0x70] sm:$0xff] %vm143_vm1, %v141_v47 }

</bundles_post_ra>
